<compile_context>
chip_gen: v6e
topology: v6e:2x2x1
jax: 0.10.0
libtpu: 0.0.40
codegen_flags: <defaults>
</compile_context>

<pallas_src>
import jax
import jax.numpy as jnp
from jax.experimental import pallas as pl
from jax.experimental.pallas import tpu as pltpu


def utterance_kernel(feat_ref, mask_ref, attw_ref, linw_ref, linb_ref,
                     outw_ref, outb_ref, sim_ref):
    feat = feat_ref[...]                              # (TN, T, H) bf16
    tn, t, h = feat.shape
    mask = mask_ref[...]                              # (TN, T) f32 = att_mask + attb

    # --- SelfAttentionPooling -------------------------------------------------
    # att_logits = W(batch_rep).squeeze(-1): bf16 multiply (temporary stays bf16) with
    # an f32-accumulated lane reduction -> (TN, T) directly (no (TN*T,1) relayout).
    attw_b = attw_ref[...].reshape(1, 1, h)           # (1,1,H) bf16
    logits = jnp.sum(feat * attw_b, axis=-1, dtype=jnp.float32) + mask

    # softmax over T (f32); reciprocal goes to the EUP (free slot).
    m = jnp.max(logits, axis=-1, keepdims=True)
    e = jnp.exp(logits - m)
    att = e * pl.reciprocal(jnp.sum(e, axis=-1, keepdims=True), approx=True)

    # utter_rep[n,h] = sum_t att[n,t] * feat[n,t,h] -> batched MXU contraction, f32 acc,
    # no full-size elementwise temporary.
    # TODO(synk): if a bundle dump shows the vext (MXU push) slot binding for a given
    # shape, fall back to a bf16 VPU multiply + sublane (axis=1) reduce here.
    att_b = att.astype(feat.dtype).reshape(tn, 1, t)                      # (TN,1,T)
    utter = jnp.einsum('nqt,nth->nqh', att_b, feat,
                       preferred_element_type=jnp.float32).reshape(tn, h)  # (TN,H) f32

    # --- head: Linear(H,H) -> Dropout (identity at eval) -> ReLU -> Linear(H,1)
    # TODO(synk): nn.Dropout(p=0.2) is implemented as identity (inference semantics).
    hid = jax.lax.dot_general(
        utter.astype(jnp.bfloat16), linw_ref[...],
        dimension_numbers=(((1,), (1,)), ((), ())),   # contract H with W's in-dim (no .T)
        preferred_element_type=jnp.float32) + linb_ref[...]
    hid = jnp.maximum(hid, 0.0)

    # output Linear(H,1) produced lane-dense as (1, TN): outw (1,H) x hid (TN,H)^T
    sim = jax.lax.dot_general(
        outw_ref[...], hid.astype(jnp.bfloat16),
        dimension_numbers=(((1,), (1,)), ((), ())),
        preferred_element_type=jnp.float32) + outb_ref[0, 0]             # (1, TN)
    sim_ref[...] = sim


def _round_up(x, m):
    return ((x + m - 1) // m) * m


def _tpu_generation():
    try:
        kind = jax.devices()[0].device_kind.lower()
    except Exception:
        return 0
    for g in (7, 6, 5, 4):
        if str(g) in kind:
            return g
    return 0


def utterance_level_model(padded_features, att_mask, params, *, max_block_rows=4096):
    """padded_features: (N, T, H); att_mask: (N, T) with 1.0 at pad. Returns (N,) f32."""
    N, T, H = padded_features.shape
    attw, attb, linw, linb, outw, outb = params

    # Stream the big tensor in bf16 (bandwidth-bound); MXU weights resident in bf16.
    feat = padded_features.astype(jnp.bfloat16)
    mask = att_mask.astype(jnp.float32) + attb[0, 0]       # fold pooling bias into mask
    attw_bf = attw.astype(jnp.bfloat16)
    linw_bf = linw.astype(jnp.bfloat16)
    outw_bf = outw.astype(jnp.bfloat16)
    linb_f = linb.astype(jnp.float32)
    outb_f = outb.astype(jnp.float32)

    # --- generation-aware VMEM budget ------------------------------------------------
    gen = _tpu_generation()
    n_cores = 2 if gen >= 7 else 1                         # v7x: 2 TensorCores / chip
    vmem_cap = (64 if gen >= 7 else 128) * 1024 * 1024     # per-TensorCore capacity
    try:
        vmem_cap = min(vmem_cap, int(pltpu.get_tpu_info().vmem_capacity_bytes))
    except Exception:
        pass
    # Leave headroom for Mosaic internal scratch: ~112 MiB on v5e/v6e, ~48 MiB on v7x.
    vmem_limit = max(vmem_cap - 16 * 1024 * 1024, 32 * 1024 * 1024)

    # TODO(synk): if production H < 128 the lane axis is under-utilized ~(128/H)x across
    # DMA/VMEM/VPU; fold consecutive frames into the lane axis in that case.
    h_l = _round_up(H, 128)      # lane-padded hidden
    t_l = _round_up(T, 128)      # lane-padded seq length (for (tn, T) arrays)
    t_s = _round_up(T, 16)       # sublane-padded seq length (bf16 (tn, T, H) tiles)

    # Per batch-row VMEM (padding-aware, conservative about the reduce widening).
    row_bytes = (
        2 * t_s * h_l * 2            # feature stream, double-buffered, bf16
        + t_s * h_l * 2              # bf16 logit product temporary
        + t_s * h_l * 4              # conservative: f32 widen of the accumulated reduce
        + 2 * t_l * 4                # mask, double-buffered, f32
        + 3 * t_l * 4 + t_l * 2      # logits / exp / att (f32) + att (bf16)
        + 2 * h_l * 4 + 2 * h_l * 2  # utter / hid f32 + bf16 copies
        + 8                          # per-row share of the (1, tn) f32 output block
        + 64
    )
    # Resident weights have constant index_maps but are still double-buffered: count 2x.
    weight_bytes = 2 * (
        16 * h_l * 2                     # attw  (1,H) bf16, tile-padded
        + _round_up(H, 16) * h_l * 2     # linw  (H,H) bf16
        + 8 * h_l * 4                    # linb  (1,H) f32
        + 16 * h_l * 2                   # outw  (1,H) bf16
    ) + 4096

    budget = max(int(vmem_limit * 0.9) - weight_bytes, row_bytes)
    tn = max(min(budget // row_bytes, max_block_rows), 8)
    tn = (tn // 8) * 8
    # Keep >= one grid step per TensorCore so dimension_semantics=("parallel",) can
    # actually shard the grid on v7x.
    tn = min(tn, max(_round_up(pl.cdiv(N, n_cores), 8), 8))
    g = pl.cdiv(N, tn)
    tn = max(_round_up(pl.cdiv(N, g), 8), 8)   # rebalance; never exceeds the caps above
    n_pad = g * tn

    feat_p = jnp.pad(feat, ((0, n_pad - N), (0, 0), (0, 0)))
    mask_p = jnp.pad(mask, ((0, n_pad - N), (0, 0)))

    cost = pl.CostEstimate(
        flops=4 * n_pad * T * H + 2 * n_pad * H * H + 2 * n_pad * H,
        transcendentals=n_pad * T,
        bytes_accessed=n_pad * T * H * 2 + n_pad * T * 4 + H * H * 2 + 6 * H + n_pad * 4,
    )

    out = pl.pallas_call(
        utterance_kernel,
        out_shape=jax.ShapeDtypeStruct((g, 1, tn), jnp.float32),
        grid=(g,),
        in_specs=[
            pl.BlockSpec((tn, T, H), lambda i: (i, 0, 0)),      # features (streamed)
            pl.BlockSpec((tn, T), lambda i: (i, 0)),            # additive mask (+attb)
            pl.BlockSpec((1, H), lambda i: (0, 0)),             # pooling.W.weight (bf16)
            pl.BlockSpec((H, H), lambda i: (0, 0)),             # linear.weight    (bf16)
            pl.BlockSpec((1, H), lambda i: (0, 0)),             # linear.bias      (f32)
            pl.BlockSpec((1, H), lambda i: (0, 0)),             # output.weight    (bf16)
            pl.BlockSpec(memory_space=pltpu.MemorySpace.SMEM),  # output.bias (scalar)
        ],
        out_specs=pl.BlockSpec((None, 1, tn), lambda i: (i, 0, 0)),   # lane-dense sim
        compiler_params=pltpu.CompilerParams(
            dimension_semantics=("parallel",),
            vmem_limit_bytes=vmem_limit),
        cost_estimate=cost,
    )(feat_p, mask_p, attw_bf, linw_bf, linb_f, outw_bf, outb_f)

    return out.reshape(-1)[:N]


def init_params(key, input_dim):
    """Deterministic synthetic parameters matching the nn.Module shapes."""
    k1, k2, k3, k4, k5, k6 = jax.random.split(key, 6)
    H = input_dim
    scale = 1.0 / jnp.sqrt(jnp.float32(H))
    attw = jax.random.uniform(k1, (1, H), jnp.float32, -scale, scale)   # pooling.W
    attb = jax.random.uniform(k2, (1, 1), jnp.float32, -scale, scale)
    linw = jax.random.uniform(k3, (H, H), jnp.float32, -scale, scale)   # linear
    linb = jax.random.uniform(k4, (1, H), jnp.float32, -scale, scale)
    outw = jax.random.uniform(k5, (1, H), jnp.float32, -scale, scale)   # output
    outb = jax.random.uniform(k6, (1, 1), jnp.float32, -scale, scale)
    return attw, attb, linw, linb, outw, outb


def reference(padded_features, att_mask, params):
    """Pure-JAX reference with the same bf16 quantization as the kernel, f32 math."""
    attw, attb, linw, linb, outw, outb = params
    x = padded_features.astype(jnp.bfloat16).astype(jnp.float32)
    attw_q = attw.astype(jnp.bfloat16).astype(jnp.float32)
    linw_q = linw.astype(jnp.bfloat16).astype(jnp.float32)
    outw_q = outw.astype(jnp.bfloat16).astype(jnp.float32)
    logits = jnp.einsum('nth,h->nt', x, attw_q[0]) + attb[0, 0] + att_mask
    att = jax.nn.softmax(logits, axis=-1)
    utter = jnp.einsum('nth,nt->nh', x, att)
    hid = jnp.maximum(utter @ linw_q.T + linb[0], 0.0)
    return (hid @ outw_q[0] + outb[0, 0]).reshape(-1)


if __name__ == "__main__":
    N, T, H = 2, 8, 32           # batch, max seq length, hidden dim
    key = jax.random.PRNGKey(0)
    kf, kp = jax.random.split(key)

    # Simulate a list of variable-length (T_i, H) features -> pad_sequence(batch_first=True)
    lengths = jnp.array([8, 5], dtype=jnp.int32)
    feats = jax.random.normal(kf, (N, T, H), jnp.float32)
    valid = (jnp.arange(T)[None, :] < lengths[:, None])          # (N, T) bool
    padded_features = jnp.where(valid[:, :, None], feats, 0.0)   # zeros at pad
    # features_padding_mask = ~(arange < lengths); torch adds the bool mask to float
    # logits, promoting to {0., 1.} -> additive +1.0 at padded positions (kept as-is).
    att_mask = (~valid).astype(jnp.float32)

    params = init_params(kp, H)

    sim = utterance_level_model(padded_features, att_mask, params)
    sim = jax.block_until_ready(sim)
    assert sim.shape == (N,)

    ref = reference(padded_features, att_mask, params)
    assert bool(jnp.all(jnp.isfinite(sim)))
    assert bool(jnp.allclose(sim, ref, atol=5e-2, rtol=5e-2))
    print("KERNEL_OK")
</pallas_src>

<mosaic_0001>
module attributes {stable_mosaic.version = 11 : i64} {
  func.func @utterance_kernel(%arg0: i32, %arg1: memref<8x8x32xbf16, #tpu.memory_space<vmem>>, %arg2: memref<8x8xf32, #tpu.memory_space<vmem>>, %arg3: memref<1x32xbf16, #tpu.memory_space<vmem>>, %arg4: memref<32x32xbf16, #tpu.memory_space<vmem>>, %arg5: memref<1x32xf32, #tpu.memory_space<vmem>>, %arg6: memref<1x32xbf16, #tpu.memory_space<vmem>>, %arg7: memref<1x1xf32, #tpu.memory_space<smem>>, %arg8: memref<1x1x8xf32, #tpu.memory_space<vmem>>) attributes {dimension_semantics = [#tpu.dimension_semantics<parallel>], iteration_bounds = array<i64: 1>, scalar_prefetch = 0 : i64, scratch_operands = 0 : i64, tpu.core_type = #tpu.core_type<tc>, window_params = [{transform_indices = @transform_0, window_bounds = array<i64: 8, 8, 32>}, {transform_indices = @transform_1, window_bounds = array<i64: 8, 8>}, {pipeline_mode = #tpu.pipeline_mode<synchronous>, transform_indices = @transform_2, window_bounds = array<i64: 1, 32>}, {pipeline_mode = #tpu.pipeline_mode<synchronous>, transform_indices = @transform_3, window_bounds = array<i64: 32, 32>}, {pipeline_mode = #tpu.pipeline_mode<synchronous>, transform_indices = @transform_4, window_bounds = array<i64: 1, 32>}, {pipeline_mode = #tpu.pipeline_mode<synchronous>, transform_indices = @transform_5, window_bounds = array<i64: 1, 32>}, {transform_indices = @transform_6, window_bounds = array<i64: 1, 1>}, {transform_indices = @transform_7, window_bounds = array<i64: 1, 1, 8>}]} {
    %c0 = arith.constant 0 : index
    %c0_0 = arith.constant 0 : index
    %c0_1 = arith.constant 0 : index
    %0 = vector.load %arg1[%c0, %c0_0, %c0_1] : memref<8x8x32xbf16, #tpu.memory_space<vmem>>, vector<8x8x32xbf16>
    %c0_2 = arith.constant 0 : index
    %c0_3 = arith.constant 0 : index
    %1 = vector.load %arg2[%c0_2, %c0_3] : memref<8x8xf32, #tpu.memory_space<vmem>>, vector<8x8xf32>
    %c0_4 = arith.constant 0 : index
    %c0_5 = arith.constant 0 : index
    %2 = vector.load %arg3[%c0_4, %c0_5] : memref<1x32xbf16, #tpu.memory_space<vmem>>, vector<1x32xbf16>
    %3 = vector.shape_cast %2 : vector<1x32xbf16> to vector<1x1x32xbf16>
    %4 = vector.broadcast %3 : vector<1x1x32xbf16> to vector<8x8x32xbf16>
    %5 = arith.mulf %0, %4 : vector<8x8x32xbf16>
    %6 = arith.extf %5 : vector<8x8x32xbf16> to vector<8x8x32xf32>
    %cst = arith.constant dense<0.000000e+00> : vector<8x8xf32>
    %7 = vector.multi_reduction <add>, %6, %cst [2] : vector<8x8x32xf32> to vector<8x8xf32>
    %8 = arith.addf %7, %1 : vector<8x8xf32>
    %cst_6 = arith.constant dense<0xFF800000> : vector<8xf32>
    %9 = vector.multi_reduction <maximumf>, %8, %cst_6 [1] : vector<8x8xf32> to vector<8xf32>
    %10 = vector.shape_cast %9 : vector<8xf32> to vector<8x1xf32>
    %11 = vector.broadcast %10 : vector<8x1xf32> to vector<8x8xf32>
    %12 = arith.subf %8, %11 : vector<8x8xf32>
    %13 = math.exp %12 : vector<8x8xf32>
    %cst_7 = arith.constant dense<0.000000e+00> : vector<8xf32>
    %14 = vector.multi_reduction <add>, %13, %cst_7 [1] : vector<8x8xf32> to vector<8xf32>
    %15 = vector.shape_cast %14 : vector<8xf32> to vector<8x1xf32>
    %16 = tpu.reciprocal %15 {approx = true} : vector<8x1xf32> -> vector<8x1xf32>
    %17 = vector.broadcast %16 : vector<8x1xf32> to vector<8x8xf32>
    %18 = arith.mulf %13, %17 : vector<8x8xf32>
    %19 = arith.truncf %18 : vector<8x8xf32> to vector<8x8xbf16>
    %20 = vector.shape_cast %19 : vector<8x8xbf16> to vector<8x1x8xbf16>
    "tpu.trace_start"() <{level = 10 : i32, message = "nqt,nth->nqh"}> : () -> ()
    %cst_8 = arith.constant dense<0.000000e+00> : vector<8x1x32xf32>
    %21 = tpu.matmul %20, %0, %cst_8 {dimension_numbers = #tpu.dot_dimension_numbers<[2], [1], [1], [2], [0, 0, 0, 1, 1, 2], [0], [0]>} : vector<8x1x8xbf16>, vector<8x8x32xbf16>, vector<8x1x32xf32> -> vector<8x1x32xf32>
    "tpu.trace_stop"() : () -> ()
    %22 = vector.shape_cast %21 : vector<8x1x32xf32> to vector<8x32xf32>
    %23 = arith.truncf %22 : vector<8x32xf32> to vector<8x32xbf16>
    %c0_9 = arith.constant 0 : index
    %c0_10 = arith.constant 0 : index
    %24 = vector.load %arg4[%c0_9, %c0_10] : memref<32x32xbf16, #tpu.memory_space<vmem>>, vector<32x32xbf16>
    %cst_11 = arith.constant dense<0.000000e+00> : vector<8x32xf32>
    %25 = tpu.matmul %23, %24, %cst_11 {dimension_numbers = #tpu.dot_dimension_numbers<[1], [1], [0], [0], [0, 0, 1, 0], [], []>} : vector<8x32xbf16>, vector<32x32xbf16>, vector<8x32xf32> -> vector<8x32xf32>
    %c0_12 = arith.constant 0 : index
    %c0_13 = arith.constant 0 : index
    %26 = vector.load %arg5[%c0_12, %c0_13] : memref<1x32xf32, #tpu.memory_space<vmem>>, vector<1x32xf32>
    %27 = vector.broadcast %26 : vector<1x32xf32> to vector<8x32xf32>
    %28 = arith.addf %25, %27 : vector<8x32xf32>
    %cst_14 = arith.constant 0.000000e+00 : f32
    %29 = vector.broadcast %cst_14 : f32 to vector<8x32xf32>
    %30 = arith.maximumf %28, %29 : vector<8x32xf32>
    %c0_15 = arith.constant 0 : index
    %c0_16 = arith.constant 0 : index
    %31 = vector.load %arg6[%c0_15, %c0_16] : memref<1x32xbf16, #tpu.memory_space<vmem>>, vector<1x32xbf16>
    %32 = arith.truncf %30 : vector<8x32xf32> to vector<8x32xbf16>
    %cst_17 = arith.constant dense<0.000000e+00> : vector<1x8xf32>
    %33 = tpu.matmul %31, %32, %cst_17 {dimension_numbers = #tpu.dot_dimension_numbers<[1], [1], [0], [0], [0, 0, 1, 0], [], []>} : vector<1x32xbf16>, vector<8x32xbf16>, vector<1x8xf32> -> vector<1x8xf32>
    %c0_18 = arith.constant 0 : index
    %c0_19 = arith.constant 0 : index
    %34 = memref.load %arg7[%c0_18, %c0_19] : memref<1x1xf32, #tpu.memory_space<smem>>
    %35 = vector.broadcast %34 : f32 to vector<1x8xf32>
    %36 = arith.addf %33, %35 : vector<1x8xf32>
    %c0_20 = arith.constant 0 : index
    %c0_21 = arith.constant 0 : index
    %c0_22 = arith.constant 0 : index
    %37 = vector.load %arg8[%c0_20, %c0_21, %c0_22] : memref<1x1x8xf32, #tpu.memory_space<vmem>>, vector<1x1x8xf32>
    %38 = vector.shape_cast %37 : vector<1x1x8xf32> to vector<1x8xf32>
    %39 = vector.shape_cast %36 : vector<1x8xf32> to vector<1x1x8xf32>
    tpu.vector_store %arg8[%c0_20, %c0_21, %c0_22], %39 {strides = array<i32>} : memref<1x1x8xf32, #tpu.memory_space<vmem>>, vector<1x1x8xf32>,
    return
  }
  func.func @transform_0(%arg0: i32) -> (i32, i32, i32) {
    %c0_i32 = arith.constant 0 : i32
    %c0_i32_0 = arith.constant 0 : i32
    %c0_i32_1 = arith.constant 0 : i32
    return %arg0, %c0_i32, %c0_i32_0 : i32, i32, i32
  }
  func.func @transform_1(%arg0: i32) -> (i32, i32) {
    %c0_i32 = arith.constant 0 : i32
    %c0_i32_0 = arith.constant 0 : i32
    return %arg0, %c0_i32 : i32, i32
  }
  func.func @transform_2(%arg0: i32) -> (i32, i32) {
    %c0_i32 = arith.constant 0 : i32
    %c0_i32_0 = arith.constant 0 : i32
    %c0_i32_1 = arith.constant 0 : i32
    return %c0_i32, %c0_i32_0 : i32, i32
  }
  func.func @transform_3(%arg0: i32) -> (i32, i32) {
    %c0_i32 = arith.constant 0 : i32
    %c0_i32_0 = arith.constant 0 : i32
    %c0_i32_1 = arith.constant 0 : i32
    return %c0_i32, %c0_i32_0 : i32, i32
  }
  func.func @transform_4(%arg0: i32) -> (i32, i32) {
    %c0_i32 = arith.constant 0 : i32
    %c0_i32_0 = arith.constant 0 : i32
    %c0_i32_1 = arith.constant 0 : i32
    return %c0_i32, %c0_i32_0 : i32, i32
  }
  func.func @transform_5(%arg0: i32) -> (i32, i32) {
    %c0_i32 = arith.constant 0 : i32
    %c0_i32_0 = arith.constant 0 : i32
    %c0_i32_1 = arith.constant 0 : i32
    return %c0_i32, %c0_i32_0 : i32, i32
  }
  func.func @transform_6(%arg0: i32) -> (i32, i32) {
    %c0_i32 = arith.constant 0 : i32
    %c0_i32_0 = arith.constant 0 : i32
    %c0_i32_1 = arith.constant 0 : i32
    return %c0_i32, %c0_i32_0 : i32, i32
  }
  func.func @transform_7(%arg0: i32) -> (i32, i32, i32) {
    %c0_i32 = arith.constant 0 : i32
    %c0_i32_0 = arith.constant 0 : i32
    %c0_i32_1 = arith.constant 0 : i32
    return %arg0, %c0_i32, %c0_i32_0 : i32, i32, i32
  }
}

</mosaic_0001>

<bundles_post_ra>
// kernel: tpu_custom_call.1
= control target key start
LH: loop header
LB: loop body
LE: loop exit
PB: predicated region body
PF: predicated region fallthrough
CT: control target
= control target key end

     0   :  { %13 = vsyncpa [#allocation4], 0  ;;  %s1612_s0 = inlined_call_operand.hbm [shape: bf16[8,8,32], index: 0, kind: input, shape index: {}]   ;;  %s1613_s1 = inlined_call_operand.hbm [shape: f32[8,8], index: 1, kind: input, shape index: {}]   ;;  %s1614_s2 = inlined_call_operand.vmem [shape: bf16[1,32], index: 2, kind: input, shape index: {}]   ;;  %s1615_s3 = inlined_call_operand.hbm [shape: bf16[32,32], index: 3, kind: input, shape index: {}]   ;;  %s1616_s4 = inlined_call_operand.vmem [shape: f32[1,32], index: 4, kind: input, shape index: {}]   ;;  %s1617_s5 = inlined_call_operand.vmem [shape: bf16[1,32], index: 5, kind: input, shape index: {}]   ;;  %s1618_s6 = inlined_call_operand.<no memory space> [shape: f32[1,1], index: 6, kind: input, shape index: {}]   ;;  %s1619_s7 = inlined_call_operand.hbm [shape: f32[1,1,8], index: 7, kind: output, shape index: {}]  }
   0x1   :  { %14 = vsyncpa [#allocation7], 0 }
   0x2   :  { %15 = vsyncpa [#allocation5], 0  ;;  %s1322_s24 = smov [#allocation6]   ;;  %s1323_s26 = smov [#allocation3]  }
   0x3   :  { %s34_s25 = sshll.u32 %s1322_s24, 4  ;;  %s21_s27 = sshll.u32 %s1323_s26, 4  ;;  %s35_s25 = int_to_ptr.vmem [resolvable:$true] %s34_s25  ;;  %s22_s27 = int_to_ptr.vmem [resolvable:$true] %s21_s27 }
   0x4   :  { %s1244_s28 = scalar_lea.vmem %s35_s25, 128  ;;  %p1249_p1 = scmp.lt.s32.totalorder %s35_s25, %s35_s25 }
   0x5   :  { %p1245_p0 = scmp.ne.s32.totalorder %s35_s25, %s1244_s28  ;;  %p1250_p2 = scmp.lt.s32.totalorder %s1244_s28, %s1244_s28 }
   0x7   :  { %p1251_p3 = por %p1250_p2, %p1249_p1 }
   0x9   :  { %p1252_p4 = pnand %p1251_p3, %p1245_p0 }
   0xb   :  { %1255 = shalt.err (!%p1252_p4)
}
   0xc   :  { %37 = dma.hbm_to_vmem [thread:$0]  %s1613_s1, 128, %s35_s25, [#allocation7]  }
   0xd   :  { %s1264_s8 = scalar_lea.vmem %s22_s27, 512  ;;  %p1269_p6 = scmp.lt.s32.totalorder %s22_s27, %s22_s27 }
   0xe   :  { %p1265_p5 = scmp.ne.s32.totalorder %s22_s27, %s1264_s8  ;;  %p1270_p7 = scmp.lt.s32.totalorder %s1264_s8, %s1264_s8 }
  0x10   :  { %p1271_p8 = por %p1270_p7, %p1269_p6 }
  0x12   :  { %p1272_p9 = pnand %p1271_p8, %p1265_p5 }
  0x14   :  { %1275 = shalt.err (!%p1272_p9)
}
  0x15   :  { %s1324_s9 = smov 64   ;;  %s1325_s10 = smov 4  }
  0x16   :  { %27 = dma.hbm_to_vmem [thread:$0]  %s1612_s0, 512, %s22_s27, [#allocation4], %s1324_s9, %s1324_s9, %s1325_s10  }
  0x17   :  { %s1326_s13 = smov [#allocation8]  }
  0x18   :  { %s45_s14 = sshll.u32 %s1326_s13, 4  ;;  %s46_s14 = int_to_ptr.vmem [resolvable:$true] %s45_s14 }
  0x19   :  { %s1284_s15 = scalar_lea.vmem %s46_s14, 256  ;;  %p1289_p11 = scmp.lt.s32.totalorder %s46_s14, %s46_s14 }
  0x1a   :  { %p1285_p10 = scmp.ne.s32.totalorder %s46_s14, %s1284_s15  ;;  %p1290_p12 = scmp.lt.s32.totalorder %s1284_s15, %s1284_s15 }
  0x1c   :  { %p1291_p13 = por %p1290_p12, %p1289_p11 }
  0x1e   :  { %p1292_p0 = pnand %p1291_p13, %p1285_p10 }
  0x20   :  { %1295 = shalt.err (!%p1292_p0)
}
  0x21   :  { %51 = dma.hbm_to_vmem [thread:$0]  %s1615_s3, 256, %s46_s14, [#allocation7], %s1324_s9, %s1324_s9, %s1325_s10  }
  0x22   :  { %1316 = dma.done.wait [#allocation4], 512  }
  0x23   :  { %1317 = vsyncadd [#allocation4], 4294966784 }
  0x24   :  { %1318 = dma.done.wait [#allocation7], 384  }
  0x25   :  { %1319 = vsyncadd [#allocation7], 4294966912  ;;  %v81_v0 = vlaneseq  ;;  %v77_v5 = vld [vmem:[%s1614_s2] sm:$0x1]  ;;  %v1391_v6 = vld [vmem:[#allocation3 + $0x8] sm:$0xf] }
  0x26   :  { %v79_v7 = vpack.i.b16 %v77_v5, %v77_v5  ;;  %v1393_v8 = vld [vmem:[#allocation3] sm:$0xf]  ;;  %v1395_v9 = vld [vmem:[#allocation3 + $0xc] sm:$0xf]  ;;  %v1397_v10 = vld [vmem:[#allocation3 + $0x4] sm:$0xf] }
  0x27   :  { %v1380_v1 = vshrl.u32 %v81_v0, 7  ;;  %v232_v2 = vand.u32 127, %v81_v0  ;;  %v1399_v11 = vld [vmem:[#allocation3 + $0x14] sm:$0xf]  ;;  %v1402_v13 = vld [vmem:[#allocation3 + $0x10] sm:$0xf] }
  0x28   :  { %vm101_vm0 = vcmask 261120   ;;  %v1410_v24 = vld [vmem:[#allocation3 + $0x1c] sm:$0xf]  ;;  %v1412_v25 = vld [vmem:[#allocation3 + $0x18] sm:$0xf]  ;;  %v76_v41 = vld [vmem:[#allocation6] sm:$0xff] }
  0x29   :  { %v1383_v3 = vsub.s32 %v232_v2, %v1380_v1  ;;  %v1386_v4 = vsub.s32 0, %v1380_v1  ;;  %v1425_v40 = vsub.s32 1, %v1380_v1  ;;  %v1429_v43 = vsub.s32 2, %v1380_v1 }
  0x2a   :  { %v1327_v44 = vmov 0   ;;  %v1433_v46 = vsub.s32 3, %v1380_v1  ;;  %v1437_v48 = vsub.s32 4, %v1380_v1  ;;  %v1441_v50 = vsub.s32 5, %v1380_v1 }
  0x2b   :  { %v84_v12 = vrot.slane %v79_v7, %v1386_v4  ;;  %v137_v42 = vrot.slane %v76_v41, %v1425_v40  ;;  %1215 = vset.pattern.permute.xlu1 %v1327_v44  ;;  %1214 = vset.pattern.permute.xlu0 %v1327_v44  ;;  %v144_v45 = vrot.slane %v76_v41, %v1429_v43  ;;  %v1445_v52 = vsub.s32 6, %v1380_v1 }
  0x2c   :  { %v130_v47 = vrot.slane %v76_v41, %v1386_v4  ;;  %v151_v49 = vrot.slane %v76_v41, %v1433_v46  ;;  %v158_v51 = vrot.slane %v76_v41, %v1437_v48  ;;  %v165_v53 = vrot.slane %v76_v41, %v1441_v50 }
  0x2d   :  { %v87_v14 = vmul.bf16 %v84_v12, %v1391_v6  ;;  %v85_v15 = vmul.bf16 %v84_v12, %v1393_v8  ;;  %v88_v16 = vmul.bf16 %v84_v12, %v1395_v9  ;;  %v86_v17 = vmul.bf16 %v84_v12, %v1397_v10 }
  0x2e   :  { %v90_v18 = vmul.bf16 %v84_v12, %v1399_v11  ;;  %v89_v19 = vmul.bf16 %v84_v12, %v1402_v13  ;;  %v92_v28 = vmul.bf16 %v84_v12, %v1410_v24  ;;  %v91_v29 = vmul.bf16 %v84_v12, %v1412_v25 }
  0x2f   :  { %v95_v20 = vunpack.c.l.bf16 %v87_v14  ;;  %v93_v21 = vunpack.c.l.bf16 %v85_v15  ;;  %v96_v22 = vunpack.c.l.bf16 %v88_v16  ;;  %v94_v23 = vunpack.c.l.bf16 %v86_v17 }
  0x30   :  { %v98_v32 = vunpack.c.l.bf16 %v90_v18  ;;  %v97_v33 = vunpack.c.l.bf16 %v89_v19  ;;  %v100_v36 = vunpack.c.l.bf16 %v92_v28  ;;  %v99_v37 = vunpack.c.l.bf16 %v91_v29 }
  0x31   :  { %v108_v26 = vsel %vm101_vm0, %v95_v20, 0.0  ;;  %v102_v27 = vsel %vm101_vm0, %v93_v21, 0.0  ;;  %v111_v30 = vsel %vm101_vm0, %v96_v22, 0.0  ;;  %v105_v31 = vsel %vm101_vm0, %v94_v23, 0.0 }
  0x32   :  { %109 = vadd.xlane.f32.xlu1 %v108_v26  ;;  %103 = vadd.xlane.f32.xlu0 %v102_v27  ;;  %v117_v34 = vsel %vm101_vm0, %v98_v32, 0.0  ;;  %v114_v35 = vsel %vm101_vm0, %v97_v33, 0.0  ;;  %v123_v38 = vsel %vm101_vm0, %v100_v36, 0.0  ;;  %v120_v39 = vsel %vm101_vm0, %v99_v37, 0.0 }
  0x33   :  { %v1449_v54 = vsub.s32 7, %v1380_v1  ;;  %v172_v55 = vrot.slane %v76_v41, %v1445_v52  ;;  %vm265_vm1 = vcmask 1041409   ;;  %vm267_vm2 = vcmask 1042434  }
  0x34   :  { %vm269_vm3 = vcmask 1043459   ;;  %vm271_vm4 = vcmask 1044484   ;;  %vm273_vm5 = vcmask 1045509   ;;  %vm275_vm6 = vcmask 1046534  }
  0x35   :  { %v179_v56 = vrot.slane %v76_v41, %v1449_v54  ;;  %vm277_vm7 = vcmask 1047559   ;;  %vm280_vm8 = vcmask 64512   ;;  %vm495_vm9 = vcmask 1043456  }
  0x36   :  { %112 = vadd.xlane.f32.xlu1 %v111_v30  ;;  %106 = vadd.xlane.f32.xlu0 %v105_v31  ;;  %vm1329_vm10 = vmmov 0   ;;  %vm1091_vm11 = vcmask 57344  }
  0x3a   :  { %118 = vadd.xlane.f32.xlu1 %v117_v34  ;;  %115 = vadd.xlane.f32.xlu0 %v114_v35 }
  0x3e   :  { %124 = vadd.xlane.f32.xlu1 %v123_v38  ;;  %121 = vadd.xlane.f32.xlu0 %v120_v39 }
  0x4f   :  { %139 = vbcast.lane.b32.xlu1 %v137_v42, 256 }
  0x53   :  { %146 = vbcast.lane.b32.xlu1 %v144_v45, 256 }
  0x54   :  { %132 = vbcast.lane.b32.xlu0 %v130_v47, 256 }
  0x57   :  { %153 = vbcast.lane.b32.xlu1 %v151_v49, 256 }
  0x58   :  { %160 = vbcast.lane.b32.xlu0 %v158_v51, 256 }
  0x5b   :  { %167 = vbcast.lane.b32.xlu1 %v165_v53, 256 }
  0x5c   :  { %174 = vbcast.lane.b32.xlu0 %v172_v55, 256 }
  0x5f   :  { %181 = vbcast.lane.b32.xlu1 %v179_v56, 256 }
  0xbb   :  { %v110_v57 = vpop.xlane.xlu1 %109  ;;  %v104_v58 = vpop.xlane.xlu0 %103 }
  0xbf   :  { %v113_v59 = vpop.xlane.xlu1 %112  ;;  %v107_v60 = vpop.xlane.xlu0 %106 }
  0xc3   :  { %v119_v61 = vpop.xlane.xlu1 %118  ;;  %v116_v62 = vpop.xlane.xlu0 %115 }
  0xc7   :  { %v125_v63 = vpop.xlane.xlu1 %124  ;;  %v122_v0 = vpop.xlane.xlu0 %121 }
  0xcb   :  { %v140_v2 = vpop.permute.xlu1 %139  ;;  %v133_v5 = vpop.permute.xlu0 %132 }
  0xcc   :  { %v192_v1 = vadd.f32 %v140_v2, %v107_v60  ;;  %v191_v7 = vadd.f32 %v133_v5, %v104_v58 }
  0xce   :  { %211 = vperm.xlu1 %1215, %v192_v1   ;;  %208 = vperm.xlu0 %1214, %v191_v7  }
  0xcf   :  { %v147_v12 = vpop.permute.xlu1 %146  ;;  %v161_v14 = vpop.permute.xlu0 %160 }
  0xd0   :  { %v193_v15 = vadd.f32 %v147_v12, %v110_v57  ;;  %v195_v17 = vadd.f32 %v161_v14, %v116_v62 }
  0xd2   :  { %214 = vperm.xlu1 %1215, %v193_v15  }
  0xd3   :  { %v154_v16 = vpop.permute.xlu1 %153  ;;  %v175_v19 = vpop.permute.xlu0 %174 }
  0xd4   :  { %v194_v18 = vadd.f32 %v154_v16, %v113_v59  ;;  %v1453_v21 = vadd.f32 %v175_v19, %v122_v0 }
  0xd6   :  { %217 = vperm.xlu0 %1214, %v194_v18   ;;  %220 = vperm.xlu1 %1215, %v195_v17  }
  0xd7   :  { %v168_v20 = vpop.permute.xlu1 %167 }
  0xd8   :  { %v196_v22 = vadd.f32 %v168_v20, %v119_v61 }
  0xda   :  { %223 = vperm.xlu0 %1214, %v196_v22   ;;  %226 = vperm.xlu1 %1215, %v1453_v21  }
  0xdb   :  { %v182_v23 = vpop.permute.xlu1 %181 }
  0xdc   :  { %v1456_v26 = vadd.f32 %v182_v23, %v125_v63 }
  0xde   :  { %229 = vperm.xlu0 %1214, %v1456_v26  }
 0x149   :  { %v212_v27 = vpop.permute.xlu1 %211  ;;  %v209_v28 = vpop.permute.xlu0 %208 }
 0x14a   :  { %v240_v30 = vrot.slane %v212_v27, %v1383_v3  ;;  %v236_v31 = vrot.slane %v209_v28, %v1383_v3 }
 0x14c   :  { %v266_v35 = vsel %vm265_vm1, %v240_v30, %v236_v31 }
 0x14d   :  { %v215_v29 = vpop.permute.xlu1 %214 }
 0x14e   :  { %v244_v32 = vrot.slane %v215_v29, %v1383_v3 }
 0x150   :  { %v268_v37 = vsel %vm267_vm2, %v244_v32, %v266_v35 }
 0x151   :  { %v221_v33 = vpop.permute.xlu1 %220  ;;  %v218_v34 = vpop.permute.xlu0 %217 }
 0x152   :  { %v248_v36 = vrot.slane %v218_v34, %v1383_v3  ;;  %v252_v38 = vrot.slane %v221_v33, %v1383_v3 }
 0x154   :  { %v270_v39 = vsel %vm269_vm3, %v248_v36, %v268_v37 }
 0x155   :  { %v227_v41 = vpop.permute.xlu1 %226  ;;  %v224_v42 = vpop.permute.xlu0 %223  ;;  %v272_v47 = vsel %vm271_vm4, %v252_v38, %v270_v39 }
 0x156   :  { %v256_v44 = vrot.slane %v224_v42, %v1383_v3  ;;  %v260_v45 = vrot.slane %v227_v41, %v1383_v3 }
 0x158   :  { %v274_v49 = vsel %vm273_vm5, %v256_v44, %v272_v47 }
 0x159   :  { %v230_v51 = vpop.permute.xlu0 %229  ;;  %v276_v55 = vsel %vm275_vm6, %v260_v45, %v274_v49 }
 0x15a   :  { %v264_v53 = vrot.slane %v230_v51, %v1383_v3 }
 0x15c   :  { %v278_v56 = vsel %vm277_vm7, %v264_v53, %v276_v55 }
 0x15d   :  { %v281_v57 = vsel %vm280_vm8, %v278_v56, -inf }
 0x15e   :  { %282 = vmax.xlane.f32.xlu1 %v281_v57 }
 0x1e7   :  { %v283_v58 = vpop.xlane.xlu1 %282 }
 0x1e8   :  { %v288_v59 = vrot.slane %v283_v58, %v1386_v4  ;;  %v292_v60 = vrot.slane %v283_v58, %v1425_v40  ;;  %v296_v61 = vrot.slane %v283_v58, %v1429_v43  ;;  %v300_v2 = vrot.slane %v283_v58, %v1433_v46 }
 0x1e9   :  { %v304_v14 = vrot.slane %v283_v58, %v1437_v48  ;;  %v308_v20 = vrot.slane %v283_v58, %v1441_v50  ;;  %v312_v28 = vrot.slane %v283_v58, %v1445_v52 }
 0x1ea   :  { %v325_v62 = vsub.f32 %v191_v7, %v288_v59  ;;  %v326_v63 = vsub.f32 %v192_v1, %v292_v60  ;;  %v327_v5 = vsub.f32 %v193_v15, %v296_v61  ;;  %v328_v16 = vsub.f32 %v194_v18, %v300_v2 }
 0x1eb   :  { %v329_v23 = vsub.f32 %v195_v17, %v304_v14  ;;  %v330_v7 = vsub.f32 %v196_v22, %v308_v20  ;;  %v316_v15 = vrot.slane %v283_v58, %v1449_v54  ;;  %v331_v30 = vsub.f32 %v1453_v21, %v312_v28 }
 0x1ec   :  { %v333_v0 = vmul.f32 1.442695, %v325_v62  ;;  %v335_v12 = vmul.f32 1.442695, %v326_v63  ;;  %v337_v19 = vmul.f32 1.442695, %v327_v5 }
 0x1ed   :  { %v339_v27 = vmul.f32 1.442695, %v328_v16  ;;  %v341_v1 = vmul.f32 1.442695, %v329_v23  ;;  %v343_v18 = vmul.f32 1.442695, %v330_v7  ;;  %v332_v32 = vsub.f32 %v1456_v26, %v316_v15 }
 0x1ee   :  { %1218 = vpow2.f32 %v333_v0  ;;  %v345_v17 = vmul.f32 1.442695, %v331_v30 }
 0x1ef   :  { %1220 = vpow2.f32 %v335_v12  ;;  %v347_v22 = vmul.f32 1.442695, %v332_v32 }
 0x1f0   :  { %1222 = vpow2.f32 %v337_v19 }
 0x1f1   :  { %1224 = vpow2.f32 %v339_v27 }
 0x1f2   :  { %1226 = vpow2.f32 %v341_v1 }
 0x1f3   :  { %1228 = vpow2.f32 %v343_v18 }
 0x1f4   :  { %1230 = vpow2.f32 %v345_v17 }
 0x1f5   :  { %1232 = vpow2.f32 %v347_v22 }
 0x1fb   :  { %v1219_v29 = vpop.eup %1218 }
 0x1fc   :  { %358 = vperm.xlu0 %1214, %v1219_v29   ;;  %v1221_v31 = vpop.eup %1220 }
 0x1fd   :  { %v1223_v33 = vpop.eup %1222 }
 0x1fe   :  { %v1485_v34 = vpop.eup %1224 }
 0x1ff   :  { %v1227_v35 = vpop.eup %1226 }
 0x200   :  { %361 = vperm.xlu0 %1214, %v1221_v31   ;;  %v1488_v21 = vpop.eup %1228 }
 0x201   :  { %v1491_v36 = vpop.eup %1230 }
 0x202   :  { %v1494_v26 = vpop.eup %1232 }
 0x204   :  { %364 = vperm.xlu0 %1214, %v1223_v33  }
 0x208   :  { %367 = vperm.xlu0 %1214, %v1485_v34  }
 0x20c   :  { %370 = vperm.xlu0 %1214, %v1227_v35  }
 0x210   :  { %373 = vperm.xlu0 %1214, %v1488_v21  }
 0x214   :  { %376 = vperm.xlu0 %1214, %v1491_v36  }
 0x218   :  { %379 = vperm.xlu0 %1214, %v1494_v26  }
 0x277   :  { %v359_v37 = vpop.permute.xlu0 %358 }
 0x278   :  { %v384_v49 = vrot.slane %v359_v37, %v1383_v3 }
 0x27b   :  { %v362_v38 = vpop.permute.xlu0 %361 }
 0x27c   :  { %v388_v45 = vrot.slane %v362_v38, %v1383_v3 }
 0x27e   :  { %v413_v56 = vsel %vm265_vm1, %v388_v45, %v384_v49 }
 0x27f   :  { %v365_v39 = vpop.permute.xlu0 %364 }
 0x280   :  { %v392_v47 = vrot.slane %v365_v39, %v1383_v3 }
 0x282   :  { %v414_v58 = vsel %vm267_vm2, %v392_v47, %v413_v56 }
 0x283   :  { %v368_v41 = vpop.permute.xlu0 %367 }
 0x284   :  { %v396_v51 = vrot.slane %v368_v41, %v1383_v3 }
 0x286   :  { %v415_v60 = vsel %vm269_vm3, %v396_v51, %v414_v58  ;;  %v721_v58 = vsel %vm495_vm9, %v1402_v13, 0 }
 0x287   :  { %v371_v42 = vpop.permute.xlu0 %370 }
 0x288   :  { %v400_v53 = vrot.slane %v371_v42, %v1383_v3 }
 0x28a   :  { %v416_v61 = vsel %vm271_vm4, %v400_v53, %v415_v60 }
 0x28b   :  { %v374_v44 = vpop.permute.xlu0 %373 }
 0x28c   :  { %v404_v57 = vrot.slane %v374_v44, %v1383_v3 }
 0x28e   :  { %v417_v63 = vsel %vm273_vm5, %v404_v57, %v416_v61 }
 0x28f   :  { %v377_v55 = vpop.permute.xlu0 %376 }
 0x290   :  { %v408_v59 = vrot.slane %v377_v55, %v1383_v3  ;;  %v665_v55 = vsel %vm495_vm9, %v1395_v9, 0 }
 0x292   :  { %v418_v2 = vsel %vm275_vm6, %v408_v59, %v417_v63  ;;  %v777_v63 = vsel %vm495_vm9, %v1399_v11, 0 }
 0x293   :  { %v380_v62 = vpop.permute.xlu0 %379 }
 0x294   :  { %v412_v0 = vrot.slane %v380_v62, %v1383_v3 }
 0x296   :  { %v419_v5 = vsel %vm277_vm7, %v412_v0, %v418_v2 }
 0x297   :  { %v421_v12 = vsel %vm280_vm8, %v419_v5, 0.0  ;;  %v833_v5 = vsel %vm495_vm9, %v1412_v25, 0 }
 0x298   :  { %422 = vadd.xlane.f32.xlu0 %v421_v12 }
 0x321   :  { %v423_v14 = vpop.xlane.xlu0 %422 }
 0x322   :  { %1234 = vrcp.f32 %v423_v14 }
 0x32f   :  { %v1235_v16 = vpop.eup %1234 }
 0x330   :  { %v445_v19 = vrot.slane %v1235_v16, %v1437_v48  ;;  %v429_v20 = vrot.slane %v1235_v16, %v1386_v4  ;;  %v433_v23 = vrot.slane %v1235_v16, %v1425_v40  ;;  %v437_v1 = vrot.slane %v1235_v16, %v1429_v43 }
 0x331   :  { %v441_v18 = vrot.slane %v1235_v16, %v1433_v46  ;;  %v449_v4 = vrot.slane %v1235_v16, %v1441_v50  ;;  %v1328_v48 = vmov 0.0   ;;  %v497_v40 = vsel %vm495_vm9, %v1393_v8, 0 }
 0x332   :  { %v470_v27 = vmul.f32 %v1227_v35, %v445_v19  ;;  %v466_v28 = vmul.f32 %v1219_v29, %v429_v20  ;;  %v467_v7 = vmul.f32 %v1221_v31, %v433_v23  ;;  %v468_v37 = vmul.f32 %v1223_v33, %v437_v1  ;;  %1143 = vmatprep.subr.bf16.mxu0 %v1328_v48  ;;  %v1216_v23 = vld [vmem:[#allocation8 + $0x8] sm:$0xff]  }
 0x333   :  { %1145 = vmatprep.mubr.msk.bf16.mxu0 %vm1329_vm10, %v1328_v48  ;;  %v469_v29 = vmul.f32 %v1485_v34, %v441_v18  ;;  %1144 = vmatpush3.bf16.msra.mxu0 %v497_v40  ;;  %v553_v50 = vsel %vm495_vm9, %v1397_v10, 0  ;;  %v471_v33 = vmul.f32 %v1488_v21, %v449_v4  ;;  %v453_v34 = vrot.slane %v1235_v16, %v1445_v52 }
 0x334   :  { %v478_v15 = vpack.c.bf16 %v470_v27, %v470_v27  ;;  %v474_v30 = vpack.c.bf16 %v466_v28, %v466_v28  ;;  %v475_v22 = vpack.c.bf16 %v467_v7, %v467_v7  ;;  %v476_v46 = vpack.c.bf16 %v468_v37, %v468_v37  ;;  %1149 = vmatprep.subr.bf16.mxu1 %v1328_v48 }
 0x335   :  { %1150 = vmatpush3.bf16.msra.mxu1 %v553_v50  ;;  %1151 = vmatprep.mubr.msk.bf16.mxu1 %vm1329_vm10, %v1328_v48  ;;  %v477_v31 = vpack.c.bf16 %v469_v29, %v469_v29  ;;  %v479_v38 = vpack.c.bf16 %v471_v33, %v471_v33  ;;  %v472_v10 = vmul.f32 %v1491_v36, %v453_v34  ;;  %v609_v36 = vsel %vm495_vm9, %v1391_v6, 0 }
 0x336   :  { %v708_v32 = vunpack.c.l.b16 %v478_v15  ;;  %v483_v17 = vunpack.c.l.b16 %v474_v30  ;;  %v540_v43 = vunpack.c.l.b16 %v475_v22  ;;  %1155 = vmatprep.subr.bf16.mxu0 %v1328_v48  ;;  %1161 = vmatprep.subr.bf16.mxu1 %v1328_v48  ;;  %v596_v8 = vunpack.c.l.b16 %v476_v46 }
 0x337   :  { %v652_v35 = vunpack.c.l.b16 %v477_v31  ;;  %v457_v39 = vrot.slane %v1235_v16, %v1449_v54  ;;  %v764_v41 = vunpack.c.l.b16 %v479_v38  ;;  %v480_v42 = vpack.c.bf16 %v472_v10, %v472_v10 }
 0x338   :  { %710 = vperm.xlu0 %1214, %v708_v32   ;;  %485 = vperm.xlu1 %1215, %v483_v17   ;;  %v889_v16 = vsel %vm495_vm9, %v1410_v24, 0  ;;  %v998_v27 = vsel %vm101_vm0, %v1216_v23, 0 }
 0x339   :  { %v473_v44 = vmul.f32 %v1494_v26, %v457_v39  ;;  %v820_v45 = vunpack.c.l.b16 %v480_v42 }
 0x33b   :  { %v481_v47 = vpack.c.bf16 %v473_v44, %v473_v44 }
 0x33c   :  { %542 = vperm.xlu1 %1215, %v540_v43  }
 0x33d   :  { %v876_v49 = vunpack.c.l.b16 %v481_v47 }
 0x340   :  { %598 = vperm.xlu1 %1215, %v596_v8  }
 0x344   :  { %654 = vperm.xlu1 %1215, %v652_v35  }
 0x348   :  { %766 = vperm.xlu1 %1215, %v764_v41  }
 0x34c   :  { %822 = vperm.xlu1 %1215, %v820_v45  }
 0x350   :  { %878 = vperm.xlu1 %1215, %v876_v49  }
 0x3b3   :  { %v486_v21 = vpop.permute.xlu1 %485  ;;  %v711_v59 = vpop.permute.xlu0 %710 }
 0x3b4   :  { %v490_v52 = vrot.slane %v486_v21, %v1383_v3  ;;  %v715_v61 = vrot.slane %v711_v59, %v1383_v3 }
 0x3b6   :  { %v491_v51 = vpack.c.b16 %v490_v52, %v490_v52  ;;  %v716_v0 = vpack.c.b16 %v715_v61, %v715_v61 }
 0x3b7   :  { %v543_v53 = vpop.permute.xlu1 %542 }
 0x3b8   :  { %v547_v54 = vrot.slane %v543_v53, %v1383_v3  ;;  %1146 = vmatmul.mubr.msk.bf16.vlgmr.msra.gmra.mxu0 %vm280_vm8, %v491_v51 }
 0x3b9   :  { %1156 = vmatpush3.bf16.msra.mxu0 %v609_v36  ;;  %1157 = vmatprep.mubr.msk.bf16.mxu0 %vm1329_vm10, %v1328_v48 }
 0x3ba   :  { %v548_v26 = vpack.c.b16 %v547_v54, %v547_v54  ;;  %1167 = vmatprep.subr.bf16.mxu0 %v1328_v48 }
 0x3bb   :  { %v599_v56 = vpop.permute.xlu1 %598 }
 0x3bc   :  { %v603_v57 = vrot.slane %v599_v56, %v1383_v3  ;;  %1152 = vmatmul.mubr.msk.bf16.vlgmr.msra.gmra.mxu1 %vm280_vm8, %v548_v26 }
 0x3bd   :  { %1162 = vmatpush3.bf16.msra.mxu1 %v665_v55  ;;  %1163 = vmatprep.mubr.msk.bf16.mxu1 %vm1329_vm10, %v1328_v48 }
 0x3be   :  { %v604_v6 = vpack.c.b16 %v603_v57, %v603_v57  ;;  %1173 = vmatprep.subr.bf16.mxu1 %v1328_v48 }
 0x3bf   :  { %v655_v60 = vpop.permute.xlu1 %654 }
 0x3c0   :  { %v659_v9 = vrot.slane %v655_v60, %v1383_v3  ;;  %1158 = vmatmul.mubr.msk.bf16.vlgmr.msra.gmra.mxu0 %vm280_vm8, %v604_v6 }
 0x3c1   :  { %1168 = vmatpush3.bf16.msra.mxu0 %v721_v58  ;;  %1169 = vmatprep.mubr.msk.bf16.mxu0 %vm1329_vm10, %v1328_v48 }
 0x3c2   :  { %v660_v62 = vpack.c.b16 %v659_v9, %v659_v9  ;;  %1179 = vmatprep.subr.bf16.mxu0 %v1328_v48 }
 0x3c3   :  { %v767_v13 = vpop.permute.xlu1 %766 }
 0x3c4   :  { %1164 = vmatmul.mubr.msk.bf16.vlgmr.msra.gmra.mxu1 %vm280_vm8, %v660_v62  ;;  %v771_v2 = vrot.slane %v767_v13, %v1383_v3 }
 0x3c5   :  { %1174 = vmatpush3.bf16.msra.mxu1 %v777_v63  ;;  %1175 = vmatprep.mubr.msk.bf16.mxu1 %vm1329_vm10, %v1328_v48 }
 0x3c6   :  { %1185 = vmatprep.subr.bf16.mxu1 %v1328_v48  ;;  %v772_v11 = vpack.c.b16 %v771_v2, %v771_v2 }
 0x3c7   :  { %v823_v12 = vpop.permute.xlu1 %822 }
 0x3c8   :  { %1170 = vmatmul.mubr.msk.bf16.vlgmr.msra.gmra.mxu0 %vm280_vm8, %v716_v0  ;;  %v827_v14 = vrot.slane %v823_v12, %v1383_v3 }
 0x3c9   :  { %1180 = vmatpush3.bf16.msra.mxu0 %v833_v5  ;;  %1181 = vmatprep.mubr.msk.bf16.mxu0 %vm1329_vm10, %v1328_v48 }
 0x3ca   :  { %1191 = vmatprep.subr.bf16.mxu0 %v1328_v48  ;;  %v828_v25 = vpack.c.b16 %v827_v14, %v827_v14 }
 0x3cb   :  { %v879_v19 = vpop.permute.xlu1 %878 }
 0x3cc   :  { %1176 = vmatmul.mubr.msk.bf16.vlgmr.msra.gmra.mxu1 %vm280_vm8, %v772_v11  ;;  %v883_v20 = vrot.slane %v879_v19, %v1383_v3  ;;  %v1217_v3 = vld [vmem:[#allocation8] sm:$0xff]  }
 0x3cd   :  { %1186 = vmatpush3.bf16.msra.mxu1 %v889_v16  ;;  %1187 = vmatprep.mubr.msk.bf16.mxu1 %vm1329_vm10, %v1328_v48  ;;  %v995_v28 = vsel %vm101_vm0, %v1217_v3, 0 }
 0x3ce   :  { %1199 = vmatprep.subr.bf16.mxu1 %v1328_v48  ;;  %v884_v24 = vpack.c.b16 %v883_v20, %v883_v20 }
 0x3d0   :  { %1182 = vmatmul.mubr.msk.bf16.vlgmr.msra.gmra.mxu0 %vm280_vm8, %v828_v25 }
 0x3d1   :  { %1195 = vmatprep.mubr.msk.bf16.mxu0 %vm1329_vm10, %v1328_v48  ;;  %1192 = vmatpush3.bf16.xpose.msra.mxu0 %v998_v27 }
 0x3d2   :  { %1193 = vmatprep.subr.bf16.mxu0 %v1328_v48 }
 0x3d4   :  { %1188 = vmatmul.mubr.msk.bf16.vlgmr.msra.gmra.mxu1 %vm280_vm8, %v884_v24 }
 0x3d5   :  { %1201 = vmatprep.mubr.msk.bf16.mxu1 %vm1329_vm10, %v1328_v48 }
 0x3d9   :  { %1194 = vmatpush3.bf16.xpose.msra.mxu0 %v995_v28  ;;  %v1117_v28 = vld [vmem:[%s1616_s4] ss:$0 sm:$0xff]  ;;  %s1330_s4 = smov [#allocation9]  }
 0x3da   :  { %s1099_s22 = sshll.u32 %s1330_s4, 4  ;;  %s1100_s22 = int_to_ptr.vmem [resolvable:$true] %s1099_s22 }
 0x3db   :  { %s1296_s23 = scalar_lea.vmem %s1100_s22, 16  ;;  %s1300_s24 = scalar_lea.vmem %s1100_s22, 32 }
 0x3dc   :  { %p1297_p1 = scmp.ne.s32.totalorder %s1100_s22, %s1296_s23  ;;  %p1301_p2 = scmp.lt.s32.totalorder %s1100_s22, %s1100_s22 }
 0x3dd   :  { %p1302_p3 = scmp.lt.s32.totalorder %s1300_s24, %s1296_s23 }
 0x3df   :  { %p1303_p4 = por %p1302_p3, %p1301_p2 }
 0x3e1   :  { %p1304_p5 = pnand %p1303_p4, %p1297_p1 }
 0x478   :  { %v533_v7 = vpop.f32.mrf.mxu0 }
 0x479   :  { %v931_v49 = vpack.c.bf16 %v533_v7, %v533_v7 }
 0x47a   :  { %v1147_v1 = vpop.f32.mrf.mxu0 }
 0x47b   :  { %v958_v6 = vunpack.c.l.b16 %v931_v49 }
 0x47c   :  { %v536_v15 = vpop.f32.mrf.mxu0  ;;  %v589_v30 = vpop.f32.mrf.mxu1 }
 0x47d   :  { %v932_v8 = vpack.c.bf16 %v589_v30, %v589_v30 }
 0x47e   :  { %v1148_v18 = vpop.f32.mrf.mxu0  ;;  %v1153_v32 = vpop.f32.mrf.mxu1 }
 0x47f   :  { %v959_v41 = vunpack.c.l.b16 %v932_v8 }
 0x480   :  { %v592_v17 = vpop.f32.mrf.mxu1  ;;  %v645_v22 = vpop.f32.mrf.mxu0 }
 0x481   :  { %v933_v31 = vpack.c.bf16 %v645_v22, %v645_v22  ;;  %v966_v53 = vrot.slane %v959_v41, 7 }
 0x482   :  { %v1154_v37 = vpop.f32.mrf.mxu1  ;;  %v1159_v4 = vpop.f32.mrf.mxu0 }
 0x483   :  { %v960_v44 = vunpack.c.l.b16 %v933_v31  ;;  %v967_v62 = vsel %vm265_vm1, %v966_v53, %v958_v6  ;;  %v1041_v37 = vld [vmem:[%s1617_s5] sm:$0x1]  ;;  %v1044_v4 = vstv %s1618_s6 }
 0x484   :  { %v648_v40 = vpop.f32.mrf.mxu0  ;;  %v701_v43 = vpop.f32.mrf.mxu1 }
 0x485   :  { %v934_v35 = vpack.c.bf16 %v701_v43, %v701_v43  ;;  %v968_v55 = vrot.slane %v960_v44, 6 }
 0x486   :  { %v1160_v46 = vpop.f32.mrf.mxu0  ;;  %v1165_v29 = vpop.f32.mrf.mxu1 }
 0x487   :  { %v961_v21 = vunpack.c.l.b16 %v934_v35  ;;  %v969_v0 = vsel %vm267_vm2, %v968_v55, %v967_v62 }
 0x488   :  { %v704_v50 = vpop.f32.mrf.mxu1  ;;  %v757_v48 = vpop.f32.mrf.mxu0 }
 0x489   :  { %v935_v38 = vpack.c.bf16 %v757_v48, %v757_v48  ;;  %v970_v58 = vrot.slane %v961_v21, 5 }
 0x48a   :  { %v1166_v33 = vpop.f32.mrf.mxu1  ;;  %v1171_v34 = vpop.f32.mrf.mxu0 }
 0x48b   :  { %v962_v52 = vunpack.c.l.b16 %v935_v38  ;;  %v971_v11 = vsel %vm269_vm3, %v970_v58, %v969_v0 }
 0x48c   :  { %v760_v10 = vpop.f32.mrf.mxu0  ;;  %v813_v39 = vpop.f32.mrf.mxu1 }
 0x48d   :  { %v936_v42 = vpack.c.bf16 %v813_v39, %v813_v39  ;;  %v972_v60 = vrot.slane %v962_v52, 4 }
 0x48e   :  { %v1172_v45 = vpop.f32.mrf.mxu0  ;;  %v1177_v47 = vpop.f32.mrf.mxu1 }
 0x48f   :  { %v963_v54 = vunpack.c.l.b16 %v936_v42  ;;  %v973_v16 = vsel %vm271_vm4, %v972_v60, %v971_v11 }
 0x490   :  { %v816_v51 = vpop.f32.mrf.mxu1  ;;  %v869_v36 = vpop.f32.mrf.mxu0 }
 0x491   :  { %v937_v26 = vpack.c.bf16 %v869_v36, %v869_v36  ;;  %v974_v63 = vrot.slane %v963_v54, 3 }
 0x492   :  { %v1178_v56 = vpop.f32.mrf.mxu1  ;;  %v1183_v57 = vpop.f32.mrf.mxu0 }
 0x493   :  { %v964_v59 = vunpack.c.l.b16 %v937_v26  ;;  %v975_v25 = vsel %vm273_vm5, %v974_v63, %v973_v16 }
 0x494   :  { %v872_v9 = vpop.f32.mrf.mxu0  ;;  %v925_v61 = vpop.f32.mrf.mxu1 }
 0x495   :  { %v938_v13 = vpack.c.bf16 %v925_v61, %v925_v61  ;;  %v976_v2 = vrot.slane %v964_v59, 2 }
 0x496   :  { %v1184_v5 = vpop.f32.mrf.mxu0  ;;  %v1189_v12 = vpop.f32.mrf.mxu1 }
 0x497   :  { %v965_v14 = vunpack.c.l.b16 %v938_v13  ;;  %v977_v24 = vsel %vm275_vm6, %v976_v2, %v975_v25 }
 0x498   :  { %v928_v19 = vpop.f32.mrf.mxu1 }
 0x499   :  { %v978_v20 = vrot.slane %v965_v14, 1 }
 0x49a   :  { %v1190_v23 = vpop.f32.mrf.mxu1 }
 0x49b   :  { %v979_v27 = vsel %vm277_vm7, %v978_v20, %v977_v24 }
 0x49c   :  { %v980_v3 = vpack.c.b16 %v979_v27, %v979_v27 }
 0x49e   :  { %1196 = vmatmul.mubr.msk.bf16.vlgmr.msra.gmra.mxu0 %vm101_vm0, %v980_v3 }
 0x55e   :  { %v1034_v7 = vpop.f32.mrf.mxu0 }
 0x55f   :  { %v1035_v1 = vadd.f32 %v1117_v28, %v1034_v7 }
 0x560   :  { %v1197_v15 = vpop.f32.mrf.mxu0 }
 0x561   :  { %v1040_v30 = vmax.f32 %v1035_v1, 0.0 }
 0x562   :  { %v1037_v18 = vpop.f32.mrf.mxu0 }
 0x563   :  { %v1042_v32 = vpack.c.bf16 %v1040_v30, %v1040_v30 }
 0x564   :  { %v1198_v17 = vpop.f32.mrf.mxu0 }
 0x565   :  { %v1049_v22 = vsel %vm101_vm0, %v1042_v32, 0 }
 0x566   :  { %1200 = vmatpush3.bf16.xpose.msra.mxu1 %v1049_v22 }
 0x56d   :  { %1202 = vmatmul.mubr.msk.bf16.vlgmr.msra.gmra.mxu1 %vm101_vm0, %v1041_v37 }
 0x62d   :  { %v1085_v40 = vpop.f32.mrf.mxu1 }
 0x62e   :  { %v1086_v43 = vadd.f32 %v1085_v40, %v1044_v4 }
 0x62f   :  { %v1203_v46 = vpop.f32.mrf.mxu1 }
 0x630   :  { %1092 = vst.msk [vmem:[#allocation9] sm:$0x1] %vm1091_vm11, %v1086_v43 }
 0x631   :  { %v1088_v29 = vpop.f32.mrf.mxu1 }
 0x632   :  { %1307 = shalt.err (!%p1304_p5)
}
 0x633   :  { %1102 = dma.vmem_to_hbm [thread:$0]  %s1100_s22, 16, %s1619_s7, [#allocation5]   ;;  %v1204_v50 = vpop.f32.mrf.mxu1 }
 0x634   :  { %1320 = dma.done.wait [#allocation5], 16  }
 0x635   :  { %1321 = vsyncadd [#allocation5], 4294967280 }
 0x636   :  { %1106 = vsyncpa [#allocation4], 1 }
 0x637   :  { %1107 = vsyncpa [#allocation7], 1 }
 0x638   :  { %1108 = vsyncpa [#allocation5], 1 }

</bundles_post_ra>
